<compile_context>
chip_gen: v7x
topology: tpu7x:2x2x1
jax: 0.10.0
libtpu: 0.0.40
codegen_flags: <defaults>
</compile_context>

<pallas_src>
import functools

import jax
import jax.numpy as jnp
from jax import lax
from jax.experimental import pallas as pl
from jax.experimental.pallas import tpu as pltpu

_EPS = 1e-5  # nn.InstanceNorm2d default (affine=False, biased variance)


def _ins_resblock_kernel(x_ref, w1_ref, b1_ref, w2_ref, b2_ref, out_ref,
                         pad_ref, patch_ref, *, H, W):
    BC = x_ref.shape[0]          # B*C rows: one (sample, channel) per sublane
    HW = H * W
    P = W + 1                    # flat zero halo on each side of the slab

    x = x_ref[...]               # (BC, HW) f32

    # Horizontal-wrap masks (indexed by OUTPUT column); computed once, reused by
    # both convs.  Vertical edges are handled by the zero halo of pad_ref.
    col = lax.broadcasted_iota(jnp.int32, (1, HW), 1) % W
    mask_left = (col != 0).astype(jnp.float32)          # valid lanes for dx == -1
    mask_right = (col != (W - 1)).astype(jnp.float32)   # valid lanes for dx == +1

    # Zero the halo once per call; both convs only rewrite the interior.
    pad_ref[:, 0:P] = jnp.zeros((BC, P), jnp.float32)
    pad_ref[:, P + HW:P + HW + P] = jnp.zeros((BC, P), jnp.float32)

    def conv3x3(inp, w_ref, b_ref):
        # Write the conv input into the interior of the zero-padded scratch.
        pad_ref[:, P:P + HW] = inp
        # Materialize each of the 9 shifted windows exactly once into the
        # stacked im2col scratch (tap-major rows); only dx = +-1 taps need the
        # horizontal wrap mask.
        for t in range(9):
            dy = t // 3 - 1
            dx = t % 3 - 1
            k = dy * W + dx
            win = pad_ref[:, P + k:P + k + HW]           # (BC, HW) static window
            if dx == -1:
                win = win * mask_left
            elif dx == 1:
                win = win * mask_right
            patch_ref[t * BC:(t + 1) * BC, :] = win
        # One MXU matmul per conv: (BC, 9*BC) x (9*BC, HW) -> (BC, HW).
        # Bias (BC, 1) broadcast over lanes, added once per output vreg.
        return jnp.dot(w_ref[...], patch_ref[...],
                       preferred_element_type=jnp.float32) + b_ref[...]

    def instance_norm(h):
        # One-pass form: sum and sum-of-squares reduce back-to-back on the XLU.
        mean = jnp.mean(h, axis=1, keepdims=True)
        mean_sq = jnp.mean(h * h, axis=1, keepdims=True)
        var = mean_sq - mean * mean                      # biased var (IN default)
        return (h - mean) * lax.rsqrt(var + _EPS)        # EUP rsqrt

    h = conv3x3(x, w1_ref, b1_ref)
    h = jnp.maximum(instance_norm(h), 0.0)               # ReLU
    h = conv3x3(h, w2_ref, b2_ref)
    out_ref[...] = instance_norm(h) + x                  # residual add


def ins_resblock_forward(x, w1, b1, w2, b2):
    """x: [B, C, H, W] NCHW.  w*: [C, C, 3, 3], b*: [C].  Returns [B, C, H, W]."""
    B, C, H, W = x.shape
    assert w1.shape == (C, C, 3, 3) and w2.shape == (C, C, 3, 3)
    HW = H * W
    BC = B * C
    P = W + 1

    # NCHW flattens straight into a (B*C, H*W) slab: batch packs the sublane
    # axis, spatial packs the lane axis (HW = 256, a multiple of 128).
    x_flat = x.reshape(BC, HW)

    def pack_weight(w):
        # (C_out, C_in, kh, kw) -> tap-major (9, C_out, C_in)
        w_taps = jnp.transpose(w, (2, 3, 0, 1)).reshape(9, C, C)
        # Block-diagonal over batch so both samples share one matmul:
        # W_big[b*C + co, t*B*C + b*C + ci] = w[co, ci, kh, kw],  t = kh*3 + kw.
        w_bd = jnp.einsum('toc,ab->aotbc', w_taps, jnp.eye(B, dtype=w.dtype))
        return w_bd.reshape(BC, 9 * BC)

    def pack_bias(b):
        # Row order is b*C + co -> repeat the per-channel bias over the batch.
        return jnp.tile(b, B).reshape(BC, 1)

    w1_big, w2_big = pack_weight(w1), pack_weight(w2)
    b1_big, b2_big = pack_bias(b1), pack_bias(b2)

    kernel = functools.partial(_ins_resblock_kernel, H=H, W=W)
    out_flat = pl.pallas_call(
        kernel,
        out_shape=jax.ShapeDtypeStruct((BC, HW), jnp.float32),
        scratch_shapes=[
            pltpu.VMEM((BC, HW + 2 * P), jnp.float32),   # zero-padded conv input
            pltpu.VMEM((9 * BC, HW), jnp.float32),       # stacked im2col slab
        ],
    )(x_flat, w1_big, b1_big, w2_big, b2_big)

    return out_flat.reshape(B, C, H, W)


def _reference_forward(x, w1, b1, w2, b2):
    dn = lax.conv_dimension_numbers(x.shape, w1.shape, ("NCHW", "OIHW", "NCHW"))

    def conv(h, w, b):
        y = lax.conv_general_dilated(h, w, (1, 1), [(1, 1), (1, 1)],
                                     dimension_numbers=dn)
        return y + b.reshape(1, -1, 1, 1)

    def inorm(h):
        mean = h.mean(axis=(2, 3), keepdims=True)
        var = h.var(axis=(2, 3), keepdims=True)
        return (h - mean) / jnp.sqrt(var + _EPS)

    h = jnp.maximum(inorm(conv(x, w1, b1)), 0.0)
    h = inorm(conv(h, w2, b2))
    return h + x


if __name__ == "__main__":
    # INSResBlock(inplanes=4, planes=4, stride=1, dropout=0.0) on a 2x4x16x16 input.
    B, C, H, W = 2, 4, 16, 16

    key = jax.random.PRNGKey(0)
    kx, k1, k2, k3, k4 = jax.random.split(key, 5)
    x = jax.random.normal(kx, (B, C, H, W), dtype=jnp.float32)

    # gaussian_weights_init: Conv weights ~ N(0, 0.02); small random biases.
    w1 = 0.02 * jax.random.normal(k1, (C, C, 3, 3), dtype=jnp.float32)
    b1 = 0.02 * jax.random.normal(k2, (C,), dtype=jnp.float32)
    w2 = 0.02 * jax.random.normal(k3, (C, C, 3, 3), dtype=jnp.float32)
    b2 = 0.02 * jax.random.normal(k4, (C,), dtype=jnp.float32)

    out = jax.jit(ins_resblock_forward)(x, w1, b1, w2, b2)
    jax.block_until_ready(out)

    ref = _reference_forward(x, w1, b1, w2, b2)
    assert out.shape == (B, C, H, W)
    assert jnp.allclose(out, ref, atol=1e-4, rtol=1e-4), "mismatch vs reference"

    print("KERNEL_OK")
</pallas_src>

<mosaic_0001>
module attributes {stable_mosaic.version = 11 : i64} {
  func.func @_ins_resblock_kernel(%arg0: memref<8x256xf32, #tpu.memory_space<vmem>>, %arg1: memref<8x72xf32, #tpu.memory_space<vmem>>, %arg2: memref<8x1xf32, #tpu.memory_space<vmem>>, %arg3: memref<8x72xf32, #tpu.memory_space<vmem>>, %arg4: memref<8x1xf32, #tpu.memory_space<vmem>>, %arg5: memref<8x256xf32, #tpu.memory_space<vmem>>, %arg6: memref<8x290xf32, #tpu.memory_space<vmem>>, %arg7: memref<72x256xf32, #tpu.memory_space<vmem>>) attributes {dimension_semantics = [], scalar_prefetch = 0 : i64, scratch_operands = 2 : i64, tpu.core_type = #tpu.core_type<tc>} {
    %c0 = arith.constant 0 : index
    %c0_0 = arith.constant 0 : index
    %0 = vector.load %arg0[%c0, %c0_0] : memref<8x256xf32, #tpu.memory_space<vmem>>, vector<8x256xf32>
    %1 = tpu.iota {dimensions = array<i32: 1>} : vector<1x256xi32>
    %c16_i32 = arith.constant 16 : i32
    %c0_i32 = arith.constant 0 : i32
    %2 = arith.cmpi eq, %c16_i32, %c0_i32 : i32
    %c1_i32 = arith.constant 1 : i32
    %3 = arith.select %2, %c1_i32, %c16_i32 : i32
    %4 = vector.broadcast %3 : i32 to vector<1x256xi32>
    %5 = arith.remsi %1, %4 : vector<1x256xi32>
    %c0_i32_1 = arith.constant 0 : i32
    %6 = vector.broadcast %c0_i32_1 : i32 to vector<1x256xi32>
    %7 = arith.cmpi ne, %5, %6 : vector<1x256xi32>
    %c0_i32_2 = arith.constant 0 : i32
    %8 = vector.broadcast %c0_i32_2 : i32 to vector<1x256xi32>
    %9 = arith.cmpi slt, %5, %8 : vector<1x256xi32>
    %c0_i32_3 = arith.constant 0 : i32
    %10 = arith.cmpi slt, %3, %c0_i32_3 : i32
    %11 = vector.broadcast %10 : i1 to vector<1x256xi1>
    %12 = vector.broadcast %11 : vector<1x256xi1> to vector<1x256xi1>
    %13 = arith.xori %9, %12 : vector<1x256xi1>
    %14 = arith.andi %13, %7 : vector<1x256xi1>
    %15 = vector.broadcast %3 : i32 to vector<1x256xi32>
    %16 = arith.addi %5, %15 : vector<1x256xi32>
    %17 = arith.select %14, %16, %5 : vector<1x256xi1>, vector<1x256xi32>
    %c0_i32_4 = arith.constant 0 : i32
    %18 = vector.broadcast %c0_i32_4 : i32 to vector<1x256xi32>
    %19 = arith.cmpi ne, %17, %18 : vector<1x256xi32>
    %20 = arith.extui %19 : vector<1x256xi1> to vector<1x256xi32>
    %21 = arith.sitofp %20 : vector<1x256xi32> to vector<1x256xf32>
    %c15_i32 = arith.constant 15 : i32
    %22 = vector.broadcast %c15_i32 : i32 to vector<1x256xi32>
    %23 = arith.cmpi ne, %17, %22 : vector<1x256xi32>
    %24 = arith.extui %23 : vector<1x256xi1> to vector<1x256xi32>
    %25 = arith.sitofp %24 : vector<1x256xi32> to vector<1x256xf32>
    %cst = arith.constant 0.000000e+00 : f32
    %26 = vector.broadcast %cst : f32 to vector<8x17xf32>
    %c0_5 = arith.constant 0 : index
    %c0_6 = arith.constant 0 : index
    %27 = vector.load %arg6[%c0_5, %c0_6] : memref<8x290xf32, #tpu.memory_space<vmem>>, vector<8x17xf32>
    tpu.vector_store %arg6[%c0_5, %c0_6], %26 {strides = array<i32>} : memref<8x290xf32, #tpu.memory_space<vmem>>, vector<8x17xf32>,
    %cst_7 = arith.constant 0.000000e+00 : f32
    %28 = vector.broadcast %cst_7 : f32 to vector<8x17xf32>
    %c0_8 = arith.constant 0 : index
    %c273 = arith.constant 273 : index
    %29 = vector.load %arg6[%c0_8, %c273] : memref<8x290xf32, #tpu.memory_space<vmem>>, vector<8x17xf32>
    tpu.vector_store %arg6[%c0_8, %c273], %28 {strides = array<i32>} : memref<8x290xf32, #tpu.memory_space<vmem>>, vector<8x17xf32>,
    %c0_9 = arith.constant 0 : index
    %c17 = arith.constant 17 : index
    %30 = vector.load %arg6[%c0_9, %c17] : memref<8x290xf32, #tpu.memory_space<vmem>>, vector<8x256xf32>
    tpu.vector_store %arg6[%c0_9, %c17], %0 {strides = array<i32>} : memref<8x290xf32, #tpu.memory_space<vmem>>, vector<8x256xf32>,
    %c0_10 = arith.constant 0 : index
    %c0_11 = arith.constant 0 : index
    %31 = vector.load %arg6[%c0_10, %c0_11] : memref<8x290xf32, #tpu.memory_space<vmem>>, vector<8x256xf32>
    %32 = vector.broadcast %21 : vector<1x256xf32> to vector<8x256xf32>
    %33 = arith.mulf %31, %32 : vector<8x256xf32>
    %c0_12 = arith.constant 0 : index
    %c0_13 = arith.constant 0 : index
    %34 = vector.load %arg7[%c0_12, %c0_13] : memref<72x256xf32, #tpu.memory_space<vmem>>, vector<8x256xf32>
    tpu.vector_store %arg7[%c0_12, %c0_13], %33 {strides = array<i32>} : memref<72x256xf32, #tpu.memory_space<vmem>>, vector<8x256xf32>,
    %c0_14 = arith.constant 0 : index
    %c1 = arith.constant 1 : index
    %35 = vector.load %arg6[%c0_14, %c1] : memref<8x290xf32, #tpu.memory_space<vmem>>, vector<8x256xf32>
    %c8 = arith.constant 8 : index
    %c0_15 = arith.constant 0 : index
    %36 = vector.load %arg7[%c8, %c0_15] : memref<72x256xf32, #tpu.memory_space<vmem>>, vector<8x256xf32>
    tpu.vector_store %arg7[%c8, %c0_15], %35 {strides = array<i32>} : memref<72x256xf32, #tpu.memory_space<vmem>>, vector<8x256xf32>,
    %c0_16 = arith.constant 0 : index
    %c2 = arith.constant 2 : index
    %37 = vector.load %arg6[%c0_16, %c2] : memref<8x290xf32, #tpu.memory_space<vmem>>, vector<8x256xf32>
    %38 = vector.broadcast %25 : vector<1x256xf32> to vector<8x256xf32>
    %39 = arith.mulf %37, %38 : vector<8x256xf32>
    %c16 = arith.constant 16 : index
    %c0_17 = arith.constant 0 : index
    %40 = vector.load %arg7[%c16, %c0_17] : memref<72x256xf32, #tpu.memory_space<vmem>>, vector<8x256xf32>
    tpu.vector_store %arg7[%c16, %c0_17], %39 {strides = array<i32>} : memref<72x256xf32, #tpu.memory_space<vmem>>, vector<8x256xf32>,
    %c0_18 = arith.constant 0 : index
    %c16_19 = arith.constant 16 : index
    %41 = vector.load %arg6[%c0_18, %c16_19] : memref<8x290xf32, #tpu.memory_space<vmem>>, vector<8x256xf32>
    %42 = vector.broadcast %21 : vector<1x256xf32> to vector<8x256xf32>
    %43 = arith.mulf %41, %42 : vector<8x256xf32>
    %c24 = arith.constant 24 : index
    %c0_20 = arith.constant 0 : index
    %44 = vector.load %arg7[%c24, %c0_20] : memref<72x256xf32, #tpu.memory_space<vmem>>, vector<8x256xf32>
    tpu.vector_store %arg7[%c24, %c0_20], %43 {strides = array<i32>} : memref<72x256xf32, #tpu.memory_space<vmem>>, vector<8x256xf32>,
    %c0_21 = arith.constant 0 : index
    %c17_22 = arith.constant 17 : index
    %45 = vector.load %arg6[%c0_21, %c17_22] : memref<8x290xf32, #tpu.memory_space<vmem>>, vector<8x256xf32>
    %c32 = arith.constant 32 : index
    %c0_23 = arith.constant 0 : index
    %46 = vector.load %arg7[%c32, %c0_23] : memref<72x256xf32, #tpu.memory_space<vmem>>, vector<8x256xf32>
    tpu.vector_store %arg7[%c32, %c0_23], %45 {strides = array<i32>} : memref<72x256xf32, #tpu.memory_space<vmem>>, vector<8x256xf32>,
    %c0_24 = arith.constant 0 : index
    %c18 = arith.constant 18 : index
    %47 = vector.load %arg6[%c0_24, %c18] : memref<8x290xf32, #tpu.memory_space<vmem>>, vector<8x256xf32>
    %48 = vector.broadcast %25 : vector<1x256xf32> to vector<8x256xf32>
    %49 = arith.mulf %47, %48 : vector<8x256xf32>
    %c40 = arith.constant 40 : index
    %c0_25 = arith.constant 0 : index
    %50 = vector.load %arg7[%c40, %c0_25] : memref<72x256xf32, #tpu.memory_space<vmem>>, vector<8x256xf32>
    tpu.vector_store %arg7[%c40, %c0_25], %49 {strides = array<i32>} : memref<72x256xf32, #tpu.memory_space<vmem>>, vector<8x256xf32>,
    %c0_26 = arith.constant 0 : index
    %c32_27 = arith.constant 32 : index
    %51 = vector.load %arg6[%c0_26, %c32_27] : memref<8x290xf32, #tpu.memory_space<vmem>>, vector<8x256xf32>
    %52 = vector.broadcast %21 : vector<1x256xf32> to vector<8x256xf32>
    %53 = arith.mulf %51, %52 : vector<8x256xf32>
    %c48 = arith.constant 48 : index
    %c0_28 = arith.constant 0 : index
    %54 = vector.load %arg7[%c48, %c0_28] : memref<72x256xf32, #tpu.memory_space<vmem>>, vector<8x256xf32>
    tpu.vector_store %arg7[%c48, %c0_28], %53 {strides = array<i32>} : memref<72x256xf32, #tpu.memory_space<vmem>>, vector<8x256xf32>,
    %c0_29 = arith.constant 0 : index
    %c33 = arith.constant 33 : index
    %55 = vector.load %arg6[%c0_29, %c33] : memref<8x290xf32, #tpu.memory_space<vmem>>, vector<8x256xf32>
    %c56 = arith.constant 56 : index
    %c0_30 = arith.constant 0 : index
    %56 = vector.load %arg7[%c56, %c0_30] : memref<72x256xf32, #tpu.memory_space<vmem>>, vector<8x256xf32>
    tpu.vector_store %arg7[%c56, %c0_30], %55 {strides = array<i32>} : memref<72x256xf32, #tpu.memory_space<vmem>>, vector<8x256xf32>,
    %c0_31 = arith.constant 0 : index
    %c34 = arith.constant 34 : index
    %57 = vector.load %arg6[%c0_31, %c34] : memref<8x290xf32, #tpu.memory_space<vmem>>, vector<8x256xf32>
    %58 = vector.broadcast %25 : vector<1x256xf32> to vector<8x256xf32>
    %59 = arith.mulf %57, %58 : vector<8x256xf32>
    %c64 = arith.constant 64 : index
    %c0_32 = arith.constant 0 : index
    %60 = vector.load %arg7[%c64, %c0_32] : memref<72x256xf32, #tpu.memory_space<vmem>>, vector<8x256xf32>
    tpu.vector_store %arg7[%c64, %c0_32], %59 {strides = array<i32>} : memref<72x256xf32, #tpu.memory_space<vmem>>, vector<8x256xf32>,
    %c0_33 = arith.constant 0 : index
    %c0_34 = arith.constant 0 : index
    %61 = vector.load %arg1[%c0_33, %c0_34] : memref<8x72xf32, #tpu.memory_space<vmem>>, vector<8x72xf32>
    %c0_35 = arith.constant 0 : index
    %c0_36 = arith.constant 0 : index
    %62 = vector.load %arg7[%c0_35, %c0_36] : memref<72x256xf32, #tpu.memory_space<vmem>>, vector<72x256xf32>
    %cst_37 = arith.constant dense<0.000000e+00> : vector<8x256xf32>
    %63 = tpu.matmul %61, %62, %cst_37 {dimension_numbers = #tpu.dot_dimension_numbers<[1], [0], [0], [1], [0, 0, 1, 1], [], []>} : vector<8x72xf32>, vector<72x256xf32>, vector<8x256xf32> -> vector<8x256xf32>
    %c0_38 = arith.constant 0 : index
    %c0_39 = arith.constant 0 : index
    %64 = vector.load %arg2[%c0_38, %c0_39] : memref<8x1xf32, #tpu.memory_space<vmem>>, vector<8x1xf32>
    %65 = vector.broadcast %64 : vector<8x1xf32> to vector<8x256xf32>
    %66 = arith.addf %63, %65 : vector<8x256xf32>
    %cst_40 = arith.constant dense<0.000000e+00> : vector<8xf32>
    %67 = vector.multi_reduction <add>, %66, %cst_40 [1] : vector<8x256xf32> to vector<8xf32>
    %68 = vector.shape_cast %67 : vector<8xf32> to vector<8x1xf32>
    %cst_41 = arith.constant 2.560000e+02 : f32
    %69 = vector.broadcast %cst_41 : f32 to vector<8x1xf32>
    %70 = arith.divf %68, %69 : vector<8x1xf32>
    %71 = arith.mulf %66, %66 : vector<8x256xf32>
    %cst_42 = arith.constant dense<0.000000e+00> : vector<8xf32>
    %72 = vector.multi_reduction <add>, %71, %cst_42 [1] : vector<8x256xf32> to vector<8xf32>
    %73 = vector.shape_cast %72 : vector<8xf32> to vector<8x1xf32>
    %cst_43 = arith.constant 2.560000e+02 : f32
    %74 = vector.broadcast %cst_43 : f32 to vector<8x1xf32>
    %75 = arith.divf %73, %74 : vector<8x1xf32>
    %76 = arith.mulf %70, %70 : vector<8x1xf32>
    %77 = arith.subf %75, %76 : vector<8x1xf32>
    %78 = vector.broadcast %70 : vector<8x1xf32> to vector<8x256xf32>
    %79 = arith.subf %66, %78 : vector<8x256xf32>
    %cst_44 = arith.constant 9.99999974E-6 : f32
    %80 = vector.broadcast %cst_44 : f32 to vector<8x1xf32>
    %81 = arith.addf %77, %80 : vector<8x1xf32>
    %82 = math.rsqrt %81 : vector<8x1xf32>
    %83 = vector.broadcast %82 : vector<8x1xf32> to vector<8x256xf32>
    %84 = arith.mulf %79, %83 : vector<8x256xf32>
    %cst_45 = arith.constant 0.000000e+00 : f32
    %85 = vector.broadcast %cst_45 : f32 to vector<8x256xf32>
    %86 = arith.maximumf %84, %85 : vector<8x256xf32>
    %c0_46 = arith.constant 0 : index
    %c17_47 = arith.constant 17 : index
    %87 = vector.load %arg6[%c0_46, %c17_47] : memref<8x290xf32, #tpu.memory_space<vmem>>, vector<8x256xf32>
    tpu.vector_store %arg6[%c0_46, %c17_47], %86 {strides = array<i32>} : memref<8x290xf32, #tpu.memory_space<vmem>>, vector<8x256xf32>,
    %c0_48 = arith.constant 0 : index
    %c0_49 = arith.constant 0 : index
    %88 = vector.load %arg6[%c0_48, %c0_49] : memref<8x290xf32, #tpu.memory_space<vmem>>, vector<8x256xf32>
    %89 = vector.broadcast %21 : vector<1x256xf32> to vector<8x256xf32>
    %90 = arith.mulf %88, %89 : vector<8x256xf32>
    %c0_50 = arith.constant 0 : index
    %c0_51 = arith.constant 0 : index
    %91 = vector.load %arg7[%c0_50, %c0_51] : memref<72x256xf32, #tpu.memory_space<vmem>>, vector<8x256xf32>
    tpu.vector_store %arg7[%c0_50, %c0_51], %90 {strides = array<i32>} : memref<72x256xf32, #tpu.memory_space<vmem>>, vector<8x256xf32>,
    %c0_52 = arith.constant 0 : index
    %c1_53 = arith.constant 1 : index
    %92 = vector.load %arg6[%c0_52, %c1_53] : memref<8x290xf32, #tpu.memory_space<vmem>>, vector<8x256xf32>
    %c8_54 = arith.constant 8 : index
    %c0_55 = arith.constant 0 : index
    %93 = vector.load %arg7[%c8_54, %c0_55] : memref<72x256xf32, #tpu.memory_space<vmem>>, vector<8x256xf32>
    tpu.vector_store %arg7[%c8_54, %c0_55], %92 {strides = array<i32>} : memref<72x256xf32, #tpu.memory_space<vmem>>, vector<8x256xf32>,
    %c0_56 = arith.constant 0 : index
    %c2_57 = arith.constant 2 : index
    %94 = vector.load %arg6[%c0_56, %c2_57] : memref<8x290xf32, #tpu.memory_space<vmem>>, vector<8x256xf32>
    %95 = vector.broadcast %25 : vector<1x256xf32> to vector<8x256xf32>
    %96 = arith.mulf %94, %95 : vector<8x256xf32>
    %c16_58 = arith.constant 16 : index
    %c0_59 = arith.constant 0 : index
    %97 = vector.load %arg7[%c16_58, %c0_59] : memref<72x256xf32, #tpu.memory_space<vmem>>, vector<8x256xf32>
    tpu.vector_store %arg7[%c16_58, %c0_59], %96 {strides = array<i32>} : memref<72x256xf32, #tpu.memory_space<vmem>>, vector<8x256xf32>,
    %c0_60 = arith.constant 0 : index
    %c16_61 = arith.constant 16 : index
    %98 = vector.load %arg6[%c0_60, %c16_61] : memref<8x290xf32, #tpu.memory_space<vmem>>, vector<8x256xf32>
    %99 = vector.broadcast %21 : vector<1x256xf32> to vector<8x256xf32>
    %100 = arith.mulf %98, %99 : vector<8x256xf32>
    %c24_62 = arith.constant 24 : index
    %c0_63 = arith.constant 0 : index
    %101 = vector.load %arg7[%c24_62, %c0_63] : memref<72x256xf32, #tpu.memory_space<vmem>>, vector<8x256xf32>
    tpu.vector_store %arg7[%c24_62, %c0_63], %100 {strides = array<i32>} : memref<72x256xf32, #tpu.memory_space<vmem>>, vector<8x256xf32>,
    %c0_64 = arith.constant 0 : index
    %c17_65 = arith.constant 17 : index
    %102 = vector.load %arg6[%c0_64, %c17_65] : memref<8x290xf32, #tpu.memory_space<vmem>>, vector<8x256xf32>
    %c32_66 = arith.constant 32 : index
    %c0_67 = arith.constant 0 : index
    %103 = vector.load %arg7[%c32_66, %c0_67] : memref<72x256xf32, #tpu.memory_space<vmem>>, vector<8x256xf32>
    tpu.vector_store %arg7[%c32_66, %c0_67], %102 {strides = array<i32>} : memref<72x256xf32, #tpu.memory_space<vmem>>, vector<8x256xf32>,
    %c0_68 = arith.constant 0 : index
    %c18_69 = arith.constant 18 : index
    %104 = vector.load %arg6[%c0_68, %c18_69] : memref<8x290xf32, #tpu.memory_space<vmem>>, vector<8x256xf32>
    %105 = vector.broadcast %25 : vector<1x256xf32> to vector<8x256xf32>
    %106 = arith.mulf %104, %105 : vector<8x256xf32>
    %c40_70 = arith.constant 40 : index
    %c0_71 = arith.constant 0 : index
    %107 = vector.load %arg7[%c40_70, %c0_71] : memref<72x256xf32, #tpu.memory_space<vmem>>, vector<8x256xf32>
    tpu.vector_store %arg7[%c40_70, %c0_71], %106 {strides = array<i32>} : memref<72x256xf32, #tpu.memory_space<vmem>>, vector<8x256xf32>,
    %c0_72 = arith.constant 0 : index
    %c32_73 = arith.constant 32 : index
    %108 = vector.load %arg6[%c0_72, %c32_73] : memref<8x290xf32, #tpu.memory_space<vmem>>, vector<8x256xf32>
    %109 = vector.broadcast %21 : vector<1x256xf32> to vector<8x256xf32>
    %110 = arith.mulf %108, %109 : vector<8x256xf32>
    %c48_74 = arith.constant 48 : index
    %c0_75 = arith.constant 0 : index
    %111 = vector.load %arg7[%c48_74, %c0_75] : memref<72x256xf32, #tpu.memory_space<vmem>>, vector<8x256xf32>
    tpu.vector_store %arg7[%c48_74, %c0_75], %110 {strides = array<i32>} : memref<72x256xf32, #tpu.memory_space<vmem>>, vector<8x256xf32>,
    %c0_76 = arith.constant 0 : index
    %c33_77 = arith.constant 33 : index
    %112 = vector.load %arg6[%c0_76, %c33_77] : memref<8x290xf32, #tpu.memory_space<vmem>>, vector<8x256xf32>
    %c56_78 = arith.constant 56 : index
    %c0_79 = arith.constant 0 : index
    %113 = vector.load %arg7[%c56_78, %c0_79] : memref<72x256xf32, #tpu.memory_space<vmem>>, vector<8x256xf32>
    tpu.vector_store %arg7[%c56_78, %c0_79], %112 {strides = array<i32>} : memref<72x256xf32, #tpu.memory_space<vmem>>, vector<8x256xf32>,
    %c0_80 = arith.constant 0 : index
    %c34_81 = arith.constant 34 : index
    %114 = vector.load %arg6[%c0_80, %c34_81] : memref<8x290xf32, #tpu.memory_space<vmem>>, vector<8x256xf32>
    %115 = vector.broadcast %25 : vector<1x256xf32> to vector<8x256xf32>
    %116 = arith.mulf %114, %115 : vector<8x256xf32>
    %c64_82 = arith.constant 64 : index
    %c0_83 = arith.constant 0 : index
    %117 = vector.load %arg7[%c64_82, %c0_83] : memref<72x256xf32, #tpu.memory_space<vmem>>, vector<8x256xf32>
    tpu.vector_store %arg7[%c64_82, %c0_83], %116 {strides = array<i32>} : memref<72x256xf32, #tpu.memory_space<vmem>>, vector<8x256xf32>,
    %c0_84 = arith.constant 0 : index
    %c0_85 = arith.constant 0 : index
    %118 = vector.load %arg3[%c0_84, %c0_85] : memref<8x72xf32, #tpu.memory_space<vmem>>, vector<8x72xf32>
    %c0_86 = arith.constant 0 : index
    %c0_87 = arith.constant 0 : index
    %119 = vector.load %arg7[%c0_86, %c0_87] : memref<72x256xf32, #tpu.memory_space<vmem>>, vector<72x256xf32>
    %cst_88 = arith.constant dense<0.000000e+00> : vector<8x256xf32>
    %120 = tpu.matmul %118, %119, %cst_88 {dimension_numbers = #tpu.dot_dimension_numbers<[1], [0], [0], [1], [0, 0, 1, 1], [], []>} : vector<8x72xf32>, vector<72x256xf32>, vector<8x256xf32> -> vector<8x256xf32>
    %c0_89 = arith.constant 0 : index
    %c0_90 = arith.constant 0 : index
    %121 = vector.load %arg4[%c0_89, %c0_90] : memref<8x1xf32, #tpu.memory_space<vmem>>, vector<8x1xf32>
    %122 = vector.broadcast %121 : vector<8x1xf32> to vector<8x256xf32>
    %123 = arith.addf %120, %122 : vector<8x256xf32>
    %cst_91 = arith.constant dense<0.000000e+00> : vector<8xf32>
    %124 = vector.multi_reduction <add>, %123, %cst_91 [1] : vector<8x256xf32> to vector<8xf32>
    %125 = vector.shape_cast %124 : vector<8xf32> to vector<8x1xf32>
    %cst_92 = arith.constant 2.560000e+02 : f32
    %126 = vector.broadcast %cst_92 : f32 to vector<8x1xf32>
    %127 = arith.divf %125, %126 : vector<8x1xf32>
    %128 = arith.mulf %123, %123 : vector<8x256xf32>
    %cst_93 = arith.constant dense<0.000000e+00> : vector<8xf32>
    %129 = vector.multi_reduction <add>, %128, %cst_93 [1] : vector<8x256xf32> to vector<8xf32>
    %130 = vector.shape_cast %129 : vector<8xf32> to vector<8x1xf32>
    %cst_94 = arith.constant 2.560000e+02 : f32
    %131 = vector.broadcast %cst_94 : f32 to vector<8x1xf32>
    %132 = arith.divf %130, %131 : vector<8x1xf32>
    %133 = arith.mulf %127, %127 : vector<8x1xf32>
    %134 = arith.subf %132, %133 : vector<8x1xf32>
    %135 = vector.broadcast %127 : vector<8x1xf32> to vector<8x256xf32>
    %136 = arith.subf %123, %135 : vector<8x256xf32>
    %cst_95 = arith.constant 9.99999974E-6 : f32
    %137 = vector.broadcast %cst_95 : f32 to vector<8x1xf32>
    %138 = arith.addf %134, %137 : vector<8x1xf32>
    %139 = math.rsqrt %138 : vector<8x1xf32>
    %140 = vector.broadcast %139 : vector<8x1xf32> to vector<8x256xf32>
    %141 = arith.mulf %136, %140 : vector<8x256xf32>
    %142 = arith.addf %141, %0 : vector<8x256xf32>
    %c0_96 = arith.constant 0 : index
    %c0_97 = arith.constant 0 : index
    %143 = vector.load %arg5[%c0_96, %c0_97] : memref<8x256xf32, #tpu.memory_space<vmem>>, vector<8x256xf32>
    tpu.vector_store %arg5[%c0_96, %c0_97], %142 {strides = array<i32>} : memref<8x256xf32, #tpu.memory_space<vmem>>, vector<8x256xf32>,
    return
  }
}

</mosaic_0001>

<bundles_post_ra>
// kernel: tile.13
= control target key start
LH: loop header
LB: loop body
LE: loop exit
PB: predicated region body
PF: predicated region fallthrough
CT: control target
= control target key end

     0   :  { %s22_s0 = inlined_call_operand.vmem [shape: f32[4], index: 0, kind: input, shape index: {}]   ;;  %s23_s1 = inlined_call_operand.vmem [shape: f32[2,4], index: 1, kind: output, shape index: {}]  }
   0x1   :  { %v4_v0 = vld [vmem:[%s22_s0] ss:$0 sm:$0xff] }
   0x2   :  { %5 = vst [vmem:[%s23_s1] sm:$0x3] %v4_v0 }

// kernel: tile.0
= control target key start
LH: loop header
LB: loop body
LE: loop exit
PB: predicated region body
PF: predicated region fallthrough
CT: control target
= control target key end

     0   :  { %s34_s8 = smov 125   ;;  %vm7_vm0 = vcmask 7168   ;;  %s35_s11 = smov 126   ;;  %s61_s0 = inlined_call_operand.vmem [shape: f32[2,4], index: 0, kind: input, shape index: {}]   ;;  %s62_s1 = inlined_call_operand.vmem [shape: f32[8,1], index: 1, kind: output, shape index: {}]  }
   0x1   :  { %v4_v0 = vld [vmem:[%s61_s0] sm:$0x3]  ;;  %s33_s0 = smov 127  }
   0x2   :  { %5 = vst [vmem:[#allocation0] sm:$0x3] %v4_v0 }
   0x9   :  { %v9_v1 = vld [vmem:[#allocation0] sm:$0x3]  }
   0xa   :  { %v21_v2 = vld [vmem:[#allocation0] sm:$0x3]   ;;  %10 = vrot.lane.b32.xlu0 %v9_v1, %s33_s0 }
   0xb   :  { %22 = vrot.lane.b32.xlu1 %v21_v2, %s34_s8  ;;  %v6_v3 = vld [vmem:[#allocation0] sm:$0x3]  }
   0xc   :  { %v15_v4 = vld [vmem:[#allocation0] sm:$0x3]   ;;  %8 = vst.msk [vmem:[%s62_s1] ss:$4 sm:$0x3] %vm7_vm0, %v6_v3  }
   0xe   :  { %16 = vrot.lane.b32.xlu0 %v15_v4, %s35_s11 }
  0x7c   :  { %v11_v5 = vpop.permute.xlu0 %10  }
  0x7d   :  { %v23_v6 = vpop.permute.xlu1 %22   ;;  %27 = vst.msk [vmem:[%s62_s1 + $0x1] ss:$4 sm:$0x3] %vm7_vm0, %v11_v5  }
  0x7e   :  { %29 = vst.msk [vmem:[%s62_s1 + $0x3] ss:$4 sm:$0x3] %vm7_vm0, %v23_v6  }
  0x80   :  { %v17_v7 = vpop.permute.xlu0 %16  }
  0x81   :  { %28 = vst.msk [vmem:[%s62_s1 + $0x2] ss:$4 sm:$0x3] %vm7_vm0, %v17_v7  }

// kernel: ins_resblock_forward.1
= control target key start
LH: loop header
LB: loop body
LE: loop exit
PB: predicated region body
PF: predicated region fallthrough
CT: control target
= control target key end

     0   :  { %v22_v0 = vlaneseq  ;;  %vm61_vm0 = vcmask 138240   ;;  %v880_v2 = vmov 0.0   ;;  %vm63_vm1 = vcmask 277640   ;;  %s881_s20 = smov 17   ;;  %s882_s23 = smov 2   ;;  %s1145_s0 = inlined_call_operand.vmem [shape: f32[8,256], index: 0, kind: input, shape index: {}]   ;;  %s1146_s2 = inlined_call_operand.vmem [shape: f32[8,1], index: 2, kind: input, shape index: {}]   ;;  %s1147_s1 = inlined_call_operand.vmem [shape: f32[8,72], index: 1, kind: input, shape index: {}]   ;;  %s1148_s4 = inlined_call_operand.vmem [shape: f32[8,1], index: 4, kind: input, shape index: {}]   ;;  %s1149_s3 = inlined_call_operand.vmem [shape: f32[8,72], index: 3, kind: input, shape index: {}]   ;;  %s1150_s5 = inlined_call_operand.vmem [shape: f32[8,256], index: 5, kind: output, shape index: {}]  }
   0x1   :  { %v929_v1 = vld [vmem:[%s1145_s0] sm:$0xff]  ;;  %62 = vst.msk [vmem:[#allocation2] sm:$0xff] %vm61_vm0, %v880_v2  ;;  %394 = vmatprep.mubr.f32.mxu0 %v880_v2  ;;  %692 = vmatprep.mubr.f32.mxu1 %v880_v2  ;;  %v937_v4 = vld [vmem:[%s1145_s0 + $0x8] sm:$0xff]  ;;  %s883_s0 = smov 18   ;;  %s884_s24 = smov 16   ;;  %vm75_vm6 = vcmask 1047688  }
   0x2   :  { %67 = vrot.lane.b32.xlu0 %v929_v1, %s881_s20  ;;  %v23_v3 = vand.u32 127, %v22_v0  ;;  %64 = vst.msk [vmem:[#allocation2 + $0x10] sm:$0xff] %vm63_vm1, %v880_v2  ;;  %s885_s25 = smov 34   ;;  %s886_s26 = smov 32   ;;  %vm113_vm7 = vcmask 15360   ;;  %vm146_vm8 = vcmask 130048  }
   0x3   :  { %s887_s27 = smov 111   ;;  %s888_s28 = smov 127   ;;  %vm196_vm9 = vcmask 146432   ;;  %vm227_vm10 = vcmask 261120   ;;  %vm277_vm11 = vcmask 277504   ;;  %v894_v56 = vmov 0  }
   0x4   :  { %v24_v5 = vadd.s32 128, %v23_v3  ;;  %v29_v6 = vand.u32 15, %v23_v3  ;;  %s889_s29 = smov 112   ;;  %s890_s30 = smov 110   ;;  %839 = vset.pattern.permute.xlu0 %v894_v56  ;;  %875 = vset.pattern.permute.xlu1 %v894_v56  ;;  %v320_v60 = vld [vmem:[%s1146_s2] sm:$0xff]  ;;  %vm97_vm12 = vcmask 1039360  }
   0x5   :  { %s891_s6 = smov 126   ;;  %s892_s7 = smov 96   ;;  %vm130_vm13 = vcmask 1031168   ;;  %vm163_vm14 = vcmask 916480   ;;  %vm182_vm15 = vcmask 908288   ;;  %vm213_vm1 = vcmask 900096  }
   0x6   :  { %69 = vrot.lane.b32.xlu0 %v937_v4, %s881_s20  ;;  %v36_v7 = vand.u32 15, %v24_v5  ;;  %vm49_vm2 = vcmp.ne.s32.totalorder %v29_v6, 0  ;;  %vm55_vm3 = vcmp.ne.s32.totalorder %v29_v6, 15  ;;  %s893_s8 = smov 95   ;;  %s895_s9 = smov 94  }
   0x7   :  { %v727_v8 = vsel %vm55_vm3, 1.0, %v880_v2  ;;  %v941_v10 = vsel %vm49_vm2, 1.0, %v880_v2  ;;  %vm244_vm2 = vcmask 785408   ;;  %vm263_vm3 = vcmask 777216  }
   0x8   :  { %vm56_vm4 = vcmp.ne.s32.totalorder %v36_v7, 15  ;;  %vm50_vm5 = vcmp.ne.s32.totalorder %v36_v7, 0 }
   0x9   :  { %v728_v9 = vsel %vm56_vm4, 1.0, %v880_v2  ;;  %v943_v11 = vsel %vm50_vm5, 1.0, %v880_v2  ;;  %vm294_vm4 = vcmask 769024   ;;  %vm326_vm5 = vcmask 588800  }
   0xa   :  { %v779_v12 = vpack.i.bf16 %v728_v9, %v727_v8  ;;  %v784_v13 = vpack.i.bf16 %v943_v11, %v941_v10 }
   0xc   :  { %780 = vrot.lane.b32.xlu1 %v779_v12, %s882_s23  ;;  %790 = vrot.lane.b32.xlu0 %v779_v12, %s883_s0 }
  0x10   :  { %785 = vrot.lane.b32.xlu1 %v784_v13, %s884_s24  ;;  %800 = vrot.lane.b32.xlu0 %v779_v12, %s885_s25 }
  0x14   :  { %795 = vrot.lane.b32.xlu1 %v784_v13, %s886_s26 }
  0x74   :  { %v68_v14 = vpop.permute.xlu0 %67 }
  0x75   :  { %76 = vst.msk [vmem:[#allocation2] sm:$0xff] %vm75_vm6, %v68_v14 }
  0x78   :  { %v70_v15 = vpop.permute.xlu0 %69 }
  0x79   :  { %78 = vst.msk [vmem:[#allocation2 + $0x10] sm:$0xff] %vm61_vm0, %v70_v15  ;;  %v956_v18 = vsel %vm61_vm0, %v68_v14, %v70_v15 }
  0x7a   :  { %v82_v3 = vmul.f32 %v943_v11, %v956_v18 }
  0x7c   :  { %v949_v16 = vld [vmem:[#allocation2] sm:$0xff] }
  0x7d   :  { %176 = vrot.lane.b32.xlu1 %v949_v16, %s887_s27  ;;  %91 = vrot.lane.b32.xlu0 %v949_v16, %s888_s28  ;;  %v81_v5 = vmul.f32 %v941_v10, %v949_v16 }
  0x7e   :  { %v781_v17 = vpop.permute.xlu1 %780  ;;  %v791_v20 = vpop.permute.xlu0 %790 }
  0x7f   :  { %v962_v22 = vunpack.i.h.bf16 %v781_v17  ;;  %v964_v23 = vunpack.i.l.bf16 %v781_v17  ;;  %v971_v27 = vunpack.i.l.bf16 %v791_v20  ;;  %v979_v30 = vunpack.i.h.bf16 %v791_v20 }
  0x80   :  { %v958_v19 = vld [vmem:[#allocation2 + $0x10] sm:$0xff] }
  0x81   :  { %v804_v21 = vpack.i.bf16 %v958_v19, %v956_v18  ;;  %v977_v29 = vsel %vm113_vm7, %v964_v23, %v962_v22  ;;  %v201_v33 = vmul.f32 %v971_v27, %v949_v16  ;;  %v118_v34 = vmul.f32 %v964_v23, %v949_v16 }
  0x82   :  { %v786_v24 = vpop.permute.xlu1 %785  ;;  %v119_v37 = vmul.f32 %v977_v29, %v956_v18  ;;  %v120_v38 = vmul.f32 %v962_v22, %v958_v19  ;;  %v1001_v39 = vsel %vm196_vm9, %v971_v27, %v979_v30  ;;  %v203_v45 = vmul.f32 %v979_v30, %v958_v19  ;;  %v801_v47 = vpop.permute.xlu0 %800 }
  0x83   :  { %v966_v25 = vunpack.i.h.bf16 %v786_v24  ;;  %v968_v26 = vunpack.i.l.bf16 %v786_v24  ;;  %805 = vrot.lane.b32.xlu1 %v804_v21, %s888_s28  ;;  %v202_v44 = vmul.f32 %v1001_v39, %v956_v18  ;;  %v1025_v52 = vunpack.i.h.bf16 %v801_v47 }
  0x84   :  { %v814_v43 = vpack.i.bf16 %v120_v38, %v119_v37  ;;  %v1027_v53 = vunpack.i.l.bf16 %v801_v47 }
  0x85   :  { %v151_v28 = vmul.f32 %v968_v26, %v949_v16  ;;  %v983_v31 = vsel %vm146_vm8, %v968_v26, %v966_v25  ;;  %v153_v36 = vmul.f32 %v966_v25, %v958_v19  ;;  %v824_v48 = vpack.i.bf16 %v203_v45, %v202_v44 }
  0x86   :  { %v796_v32 = vpop.permute.xlu1 %795  ;;  %v152_v35 = vmul.f32 %v983_v31, %v956_v18  ;;  %v1033_v55 = vsel %vm277_vm11, %v1027_v53, %v1025_v52  ;;  %v284_v58 = vmul.f32 %v1025_v52, %v958_v19  ;;  %v282_v59 = vmul.f32 %v1027_v53, %v949_v16 }
  0x87   :  { %157 = vrot.lane.b32.xlu0 %v151_v28, %s889_s29  ;;  %810 = vrot.lane.b32.xlu1 %v804_v21, %s887_s27  ;;  %v1003_v40 = vunpack.i.h.bf16 %v796_v32  ;;  %v1005_v41 = vunpack.i.l.bf16 %v796_v32  ;;  %v283_v57 = vmul.f32 %v1033_v55, %v956_v18 }
  0x88   :  { %v819_v42 = vpack.i.bf16 %v153_v36, %v152_v35 }
  0x89   :  { %v1015_v46 = vsel %vm227_vm10, %v1005_v41, %v1003_v40  ;;  %v232_v49 = vmul.f32 %v1005_v41, %v949_v16  ;;  %v234_v51 = vmul.f32 %v1003_v40, %v958_v19 }
  0x8a   :  { %v233_v50 = vmul.f32 %v1015_v46, %v956_v18 }
  0x8b   :  { %207 = vrot.lane.b32.xlu0 %v201_v33, %s890_s30  ;;  %124 = vrot.lane.b32.xlu1 %v118_v34, %s891_s6 }
  0x8c   :  { %v834_v54 = vpack.i.bf16 %v234_v51, %v233_v50 }
  0x8f   :  { %820 = vrot.lane.b32.xlu0 %v819_v42, %s889_s29  ;;  %815 = vrot.lane.b32.xlu1 %v814_v43, %s891_s6 }
  0x93   :  { %825 = vrot.lane.b32.xlu0 %v824_v48, %s890_s30  ;;  %238 = vrot.lane.b32.xlu1 %v232_v49, %s892_s7 }
  0x97   :  { %830 = vrot.lane.b32.xlu0 %v804_v21, %s893_s8  ;;  %835 = vrot.lane.b32.xlu1 %v834_v54, %s892_s7 }
  0x9b   :  { %257 = vrot.lane.b32.xlu0 %v949_v16, %s893_s8  ;;  %290 = vrot.lane.b32.xlu1 %v283_v57, %s895_s9 }
  0x9f   :  { %292 = vrot.lane.b32.xlu0 %v284_v58, %s895_s9  ;;  %288 = vrot.lane.b32.xlu1 %v282_v59, %s895_s9 }
  0xa3   :  { %323 = vperm.xlu0 %839, %v320_v60  }
  0xef   :  { %v177_v61 = vpop.permute.xlu1 %176  ;;  %v92_v62 = vpop.permute.xlu0 %91 }
  0xf5   :  { %v806_v63 = vpop.permute.xlu1 %805 }
  0xf6   :  { %v808_v0 = vunpack.i.h.bf16 %v806_v63  ;;  %v807_v2 = vunpack.i.l.bf16 %v806_v63 }
  0xf8   :  { %v99_v6 = vsel %vm97_vm12, %v807_v2, %v808_v0  ;;  %v98_v7 = vsel %vm97_vm12, %v92_v62, %v807_v2 }
  0xf9   :  { %v158_v8 = vpop.permute.xlu0 %157  ;;  %v811_v9 = vpop.permute.xlu1 %810  ;;  %v731_v12 = vpack.c.bf16 %v99_v6, %v82_v3  ;;  %v733_v13 = vpack.c.bf16 %v98_v7, %v81_v5 }
  0xfa   :  { %v813_v24 = vunpack.i.h.bf16 %v811_v9  ;;  %v812_v28 = vunpack.i.l.bf16 %v811_v9 }
  0xfb   :  { %732 = vmatprep.subr.bf16.mxu0 %v731_v12  ;;  %v301_v12 = vld [vmem:[%s1147_s1] sm:$0xff] }
  0xfc   :  { %734 = vmatpush1.bf16.msra.mxu0 %v733_v13  ;;  %v184_v45 = vsel %vm182_vm15, %v812_v28, %v813_v24  ;;  %v183_v48 = vsel %vm182_vm15, %v177_v61, %v812_v28 }
  0xfd   :  { %v208_v14 = vpop.permute.xlu0 %207  ;;  %v125_v15 = vpop.permute.xlu1 %124 }
 0x101   :  { %v821_v17 = vpop.permute.xlu0 %820  ;;  %v816_v19 = vpop.permute.xlu1 %815 }
 0x102   :  { %v823_v18 = vunpack.i.h.bf16 %v821_v17  ;;  %v822_v20 = vunpack.i.l.bf16 %v821_v17  ;;  %v818_v21 = vunpack.i.h.bf16 %v816_v19  ;;  %v817_v16 = vunpack.i.l.bf16 %v816_v19 }
 0x104   :  { %v132_v32 = vsel %vm130_vm13, %v817_v16, %v818_v21  ;;  %v165_v33 = vsel %vm163_vm14, %v822_v20, %v823_v18  ;;  %v131_v34 = vsel %vm130_vm13, %v125_v15, %v817_v16  ;;  %v164_v35 = vsel %vm163_vm14, %v158_v8, %v822_v20 }
 0x105   :  { %v826_v36 = vpop.permute.xlu0 %825  ;;  %v239_v37 = vpop.permute.xlu1 %238  ;;  %v735_v38 = vpack.c.bf16 %v165_v33, %v132_v32  ;;  %v737_v42 = vpack.c.bf16 %v164_v35, %v131_v34 }
 0x106   :  { %v828_v43 = vunpack.i.h.bf16 %v826_v36  ;;  %v827_v44 = vunpack.i.l.bf16 %v826_v36 }
 0x107   :  { %736 = vmatprep.subr.bf16.mxu0 %v735_v38 }
 0x108   :  { %738 = vmatpush1.bf16.msra.mxu0 %v737_v42  ;;  %v215_v47 = vsel %vm213_vm1, %v827_v44, %v828_v43  ;;  %v214_v49 = vsel %vm213_vm1, %v208_v14, %v827_v44 }
 0x109   :  { %v831_v50 = vpop.permute.xlu0 %830  ;;  %v836_v51 = vpop.permute.xlu1 %835  ;;  %v739_v54 = vpack.c.bf16 %v215_v47, %v184_v45  ;;  %v741_v56 = vpack.c.bf16 %v214_v49, %v183_v48 }
 0x10a   :  { %v833_v57 = vunpack.i.h.bf16 %v831_v50  ;;  %v832_v58 = vunpack.i.l.bf16 %v831_v50  ;;  %v838_v59 = vunpack.i.h.bf16 %v836_v51  ;;  %v837_v60 = vunpack.i.l.bf16 %v836_v51 }
 0x10b   :  { %740 = vmatprep.subr.bf16.mxu0 %v739_v54 }
 0x10c   :  { %742 = vmatpush1.bf16.msra.mxu0 %v741_v56  ;;  %v246_v62 = vsel %vm244_vm2, %v837_v60, %v838_v59  ;;  %v265_v63 = vsel %vm263_vm3, %v832_v58, %v833_v57  ;;  %v245_v3 = vsel %vm244_vm2, %v239_v37, %v837_v60 }
 0x10d   :  { %v258_v0 = vpop.permute.xlu0 %257  ;;  %v291_v61 = vpop.permute.xlu1 %290  ;;  %v743_v2 = vpack.c.bf16 %v265_v63, %v246_v62 }
 0x10e   :  { %v264_v5 = vsel %vm263_vm3, %v258_v0, %v832_v58 }
 0x10f   :  { %v745_v6 = vpack.c.bf16 %v264_v5, %v245_v3  ;;  %744 = vmatprep.subr.bf16.mxu0 %v743_v2 }
 0x111   :  { %v293_v7 = vpop.permute.xlu0 %292  ;;  %746 = vmatpush1.bf16.msra.mxu0 %v745_v6  ;;  %v289_v8 = vpop.permute.xlu1 %288 }
 0x112   :  { %v296_v9 = vsel %vm294_vm4, %v291_v61, %v293_v7  ;;  %v295_v13 = vsel %vm294_vm4, %v289_v8, %v291_v61 }
 0x113   :  { %346 = vmatprep.subr.mxu0 %v296_v9 }
 0x115   :  { %347 = vmatpush1.msra.mxu0 %v295_v13 }
 0x116   :  { %729 = vmatmul.mubr.msk.f32.vlgmr.msra.gmra.mrb[0].mxu0 %vm326_vm5, %v301_v12 }
 0x122   :  { %v324_v14 = vpop.permute.xlu0 %323 }
 0x1e9   :  { %v396_v15 = vpop.f32.mrb[0].mxu0 }
 0x1ea   :  { %v397_v17 = vadd.f32 %v396_v15, %v324_v14  ;;  %v398_v19 = vpop.f32.mrb[1].mxu0 }
 0x1eb   :  { %v399_v18 = vadd.f32 %v398_v19, %v324_v14 }
 0x1ec   :  { %v406_v20 = vmul.f32 %v397_v17, %v397_v17 }
 0x1ed   :  { %v401_v21 = vadd.f32 %v399_v18, %v397_v17  ;;  %v407_v16 = vmul.f32 %v399_v18, %v399_v18 }
 0x1ef   :  { %402 = vadd.xlane.f32.xlu1 %v401_v21  ;;  %v408_v24 = vadd.f32 %v407_v16, %v406_v20 }
 0x1f1   :  { %409 = vadd.xlane.f32.xlu0 %v408_v24 }
 0x27c   :  { %v403_v28 = vpop.xlane.xlu1 %402 }
 0x27d   :  { %v405_v32 = vmul.f32 0.00390625, %v403_v28 }
 0x27e   :  { %v410_v33 = vpop.xlane.xlu0 %409 }
 0x27f   :  { %v411_v34 = vmul.f32 0.00390625, %v410_v33  ;;  %v412_v35 = vmul.f32 %v405_v32, %v405_v32  ;;  %v414_v38 = vsub.f32 %v397_v17, %v405_v32  ;;  %v415_v42 = vsub.f32 %v399_v18, %v405_v32 }
 0x281   :  { %v413_v36 = vsub.f32 %v411_v34, %v412_v35 }
 0x283   :  { %v416_v37 = vadd.f32 1e-05, %v413_v36 }
 0x285   :  { %876 = vrsqrt.f32 %v416_v37 }
 0x28f   :  { %v877_v43 = vpop.eup %876 }
 0x290   :  { %v419_v44 = vmul.f32 %v877_v43, %v415_v42  ;;  %v418_v45 = vmul.f32 %v877_v43, %v414_v38 }
 0x292   :  { %v421_v47 = vmax.f32 %v419_v44, 0.0  ;;  %v420_v48 = vmax.f32 %v418_v45, 0.0 }
 0x294   :  { %426 = vrot.lane.b32.xlu0 %v421_v47, %s881_s20  ;;  %424 = vrot.lane.b32.xlu1 %v420_v48, %s881_s20 }
 0x306   :  { %v427_v49 = vpop.permute.xlu0 %426  ;;  %v425_v50 = vpop.permute.xlu1 %424 }
 0x307   :  { %434 = vst.msk [vmem:[#allocation2 + $0x10] sm:$0xff] %vm61_vm0, %v427_v49  ;;  %v428_v51 = vsel %vm61_vm0, %v425_v50, %v427_v49 }
 0x308   :  { %432 = vst.msk [vmem:[#allocation2] sm:$0xff] %vm75_vm6, %v425_v50  ;;  %v463_v62 = vmul.f32 %v428_v51, %v977_v29 }
 0x30e   :  { %v503_v56 = vld [vmem:[#allocation2 + $0x10] sm:$0xff] }
 0x30f   :  { %v501_v54 = vld [vmem:[#allocation2] sm:$0xff]  ;;  %v845_v57 = vpack.i.bf16 %v503_v56, %v428_v51  ;;  %v464_v60 = vmul.f32 %v962_v22, %v503_v56  ;;  %v485_v61 = vmul.f32 %v966_v25, %v503_v56  ;;  %v545_v2 = vmul.f32 %v1003_v40, %v503_v56 }
 0x310   :  { %507 = vrot.lane.b32.xlu0 %v501_v54, %s887_s27  ;;  %447 = vrot.lane.b32.xlu1 %v501_v54, %s888_s28  ;;  %v462_v58 = vmul.f32 %v964_v23, %v501_v54  ;;  %v483_v59 = vmul.f32 %v968_v26, %v501_v54  ;;  %v522_v0 = vmul.f32 %v971_v27, %v501_v54  ;;  %v619_v40 = vld [vmem:[%s1148_s4] sm:$0xff] }
 0x311   :  { %v850_v63 = vpack.i.bf16 %v464_v60, %v463_v62  ;;  %v484_v23 = vmul.f32 %v428_v51, %v983_v31  ;;  %v543_v26 = vmul.f32 %v1005_v41, %v501_v54  ;;  %v524_v3 = vmul.f32 %v979_v30, %v503_v56 }
 0x312   :  { %v544_v27 = vmul.f32 %v428_v51, %v1015_v46  ;;  %v523_v25 = vmul.f32 %v428_v51, %v1001_v39  ;;  %v583_v31 = vmul.f32 %v428_v51, %v1033_v55  ;;  %v582_v30 = vmul.f32 %v1027_v53, %v501_v54 }
 0x313   :  { %v855_v22 = vpack.i.bf16 %v485_v61, %v484_v23  ;;  %v584_v39 = vmul.f32 %v1025_v52, %v503_v56  ;;  %v438_v53 = vmul.f32 %v943_v11, %v428_v51  ;;  %v437_v9 = vmul.f32 %v941_v10, %v501_v54 }
 0x314   :  { %846 = vrot.lane.b32.xlu0 %v845_v57, %s887_s27  ;;  %841 = vrot.lane.b32.xlu1 %v845_v57, %s888_s28  ;;  %v870_v29 = vpack.i.bf16 %v545_v2, %v544_v27  ;;  %v860_v5 = vpack.i.bf16 %v524_v3, %v523_v25 }
 0x318   :  { %468 = vrot.lane.b32.xlu0 %v462_v58, %s891_s6  ;;  %489 = vrot.lane.b32.xlu1 %v483_v59, %s889_s29 }
 0x31c   :  { %851 = vrot.lane.b32.xlu0 %v850_v63, %s891_s6  ;;  %528 = vrot.lane.b32.xlu1 %v522_v0, %s890_s30 }
 0x320   :  { %549 = vrot.lane.b32.xlu0 %v543_v26, %s892_s7  ;;  %856 = vrot.lane.b32.xlu1 %v855_v22, %s889_s29 }
 0x324   :  { %871 = vrot.lane.b32.xlu0 %v870_v29, %s892_s7  ;;  %861 = vrot.lane.b32.xlu1 %v860_v5, %s890_s30  ;;  %v600_v29 = vld [vmem:[%s1149_s3] sm:$0xff] }
 0x328   :  { %590 = vrot.lane.b32.xlu0 %v583_v31, %s895_s9  ;;  %866 = vrot.lane.b32.xlu1 %v845_v57, %s893_s8 }
 0x32c   :  { %588 = vrot.lane.b32.xlu0 %v582_v30, %s895_s9  ;;  %567 = vrot.lane.b32.xlu1 %v501_v54, %s893_s8 }
 0x330   :  { %592 = vrot.lane.b32.xlu1 %v584_v39, %s895_s9 }
 0x334   :  { %622 = vperm.xlu1 %875, %v619_v40  }
 0x382   :  { %v508_v41 = vpop.permute.xlu0 %507  ;;  %v448_v46 = vpop.permute.xlu1 %447 }
 0x386   :  { %v847_v55 = vpop.permute.xlu0 %846  ;;  %v842_v6 = vpop.permute.xlu1 %841 }
 0x387   :  { %v844_v7 = vunpack.i.h.bf16 %v842_v6  ;;  %v843_v8 = vunpack.i.l.bf16 %v842_v6  ;;  %v849_v32 = vunpack.i.h.bf16 %v847_v55  ;;  %v848_v10 = vunpack.i.l.bf16 %v847_v55 }
 0x389   :  { %v454_v12 = vsel %vm97_vm12, %v843_v8, %v844_v7  ;;  %v453_v52 = vsel %vm97_vm12, %v448_v46, %v843_v8  ;;  %v514_v47 = vsel %vm182_vm15, %v848_v10, %v849_v32  ;;  %v513_v48 = vsel %vm182_vm15, %v508_v41, %v848_v10 }
 0x38a   :  { %v469_v13 = vpop.permute.xlu0 %468  ;;  %v490_v14 = vpop.permute.xlu1 %489  ;;  %v747_v15 = vpack.c.bf16 %v454_v12, %v438_v53  ;;  %v749_v17 = vpack.c.bf16 %v453_v52, %v437_v9 }
 0x38c   :  { %748 = vmatprep.subr.bf16.mxu1 %v747_v15 }
 0x38d   :  { %750 = vmatpush1.bf16.msra.mxu1 %v749_v17 }
 0x38e   :  { %v852_v19 = vpop.permute.xlu0 %851  ;;  %v529_v18 = vpop.permute.xlu1 %528 }
 0x38f   :  { %v854_v20 = vunpack.i.h.bf16 %v852_v19  ;;  %v853_v21 = vunpack.i.l.bf16 %v852_v19 }
 0x391   :  { %v475_v33 = vsel %vm130_vm13, %v853_v21, %v854_v20  ;;  %v474_v35 = vsel %vm130_vm13, %v469_v13, %v853_v21 }
 0x392   :  { %v550_v16 = vpop.permute.xlu0 %549  ;;  %v857_v24 = vpop.permute.xlu1 %856 }
 0x393   :  { %v859_v28 = vunpack.i.h.bf16 %v857_v24  ;;  %v858_v11 = vunpack.i.l.bf16 %v857_v24 }
 0x395   :  { %v496_v34 = vsel %vm163_vm14, %v858_v11, %v859_v28  ;;  %v495_v36 = vsel %vm163_vm14, %v490_v14, %v858_v11 }
 0x396   :  { %v872_v37 = vpop.permute.xlu0 %871  ;;  %v862_v38 = vpop.permute.xlu1 %861  ;;  %v751_v42 = vpack.c.bf16 %v496_v34, %v475_v33  ;;  %v753_v43 = vpack.c.bf16 %v495_v36, %v474_v35 }
 0x397   :  { %v864_v44 = vunpack.i.h.bf16 %v862_v38  ;;  %v863_v45 = vunpack.i.l.bf16 %v862_v38  ;;  %v874_v49 = vunpack.i.h.bf16 %v872_v37  ;;  %v873_v50 = vunpack.i.l.bf16 %v872_v37 }
 0x398   :  { %752 = vmatprep.subr.bf16.mxu1 %v751_v42 }
 0x399   :  { %754 = vmatpush1.bf16.msra.mxu1 %v753_v43  ;;  %v535_v51 = vsel %vm213_vm1, %v863_v45, %v864_v44  ;;  %v534_v54 = vsel %vm213_vm1, %v529_v18, %v863_v45  ;;  %v556_v63 = vsel %vm244_vm2, %v873_v50, %v874_v49  ;;  %v555_v26 = vsel %vm244_vm2, %v550_v16, %v873_v50 }
 0x39a   :  { %v867_v56 = vpop.permute.xlu1 %866  ;;  %v755_v57 = vpack.c.bf16 %v535_v51, %v514_v47  ;;  %v757_v58 = vpack.c.bf16 %v534_v54, %v513_v48  ;;  %v591_v62 = vpop.permute.xlu0 %590 }
 0x39b   :  { %v869_v59 = vunpack.i.h.bf16 %v867_v56  ;;  %v868_v60 = vunpack.i.l.bf16 %v867_v56 }
 0x39c   :  { %756 = vmatprep.subr.bf16.mxu1 %v755_v57 }
 0x39d   :  { %758 = vmatpush1.bf16.msra.mxu1 %v757_v58  ;;  %v574_v0 = vsel %vm263_vm3, %v868_v60, %v869_v59 }
 0x39e   :  { %v568_v61 = vpop.permute.xlu1 %567  ;;  %v759_v23 = vpack.c.bf16 %v574_v0, %v556_v63  ;;  %v589_v3 = vpop.permute.xlu0 %588 }
 0x39f   :  { %v573_v22 = vsel %vm263_vm3, %v568_v61, %v868_v60  ;;  %v594_v5 = vsel %vm294_vm4, %v589_v3, %v591_v62 }
 0x3a0   :  { %v761_v2 = vpack.c.bf16 %v573_v22, %v555_v26  ;;  %760 = vmatprep.subr.bf16.mxu1 %v759_v23 }
 0x3a2   :  { %v593_v27 = vpop.permute.xlu1 %592  ;;  %762 = vmatpush1.bf16.msra.mxu1 %v761_v2 }
 0x3a3   :  { %v595_v25 = vsel %vm294_vm4, %v591_v62, %v593_v27 }
 0x3a4   :  { %644 = vmatprep.subr.mxu1 %v595_v25 }
 0x3a6   :  { %645 = vmatpush1.msra.mxu1 %v594_v5 }
 0x3a7   :  { %730 = vmatmul.mubr.msk.f32.vlgmr.msra.gmra.mrb[0].mxu1 %vm326_vm5, %v600_v29 }
 0x3b3   :  { %v623_v31 = vpop.permute.xlu1 %622 }
 0x47a   :  { %v694_v30 = vpop.f32.mrb[0].mxu1 }
 0x47b   :  { %v695_v39 = vadd.f32 %v694_v30, %v623_v31  ;;  %v696_v40 = vpop.f32.mrb[1].mxu1 }
 0x47c   :  { %v697_v41 = vadd.f32 %v696_v40, %v623_v31 }
 0x47d   :  { %v703_v46 = vmul.f32 %v695_v39, %v695_v39 }
 0x47e   :  { %v699_v55 = vadd.f32 %v697_v41, %v695_v39  ;;  %v704_v6 = vmul.f32 %v697_v41, %v697_v41 }
 0x480   :  { %700 = vadd.xlane.f32.xlu0 %v699_v55  ;;  %v705_v7 = vadd.f32 %v704_v6, %v703_v46 }
 0x482   :  { %706 = vadd.xlane.f32.xlu1 %v705_v7 }
 0x50d   :  { %v701_v8 = vpop.xlane.xlu0 %700 }
 0x50e   :  { %v702_v53 = vmul.f32 0.00390625, %v701_v8 }
 0x50f   :  { %v707_v9 = vpop.xlane.xlu1 %706 }
 0x510   :  { %v708_v12 = vmul.f32 0.00390625, %v707_v9  ;;  %v709_v52 = vmul.f32 %v702_v53, %v702_v53  ;;  %v711_v15 = vsub.f32 %v695_v39, %v702_v53  ;;  %v712_v17 = vsub.f32 %v697_v41, %v702_v53 }
 0x512   :  { %v710_v13 = vsub.f32 %v708_v12, %v709_v52 }
 0x514   :  { %v713_v14 = vadd.f32 1e-05, %v710_v13 }
 0x516   :  { %878 = vrsqrt.f32 %v713_v14 }
 0x520   :  { %v879_v19 = vpop.eup %878 }
 0x521   :  { %v715_v18 = vmul.f32 %v879_v19, %v711_v15  ;;  %v716_v20 = vmul.f32 %v879_v19, %v712_v17 }
 0x523   :  { %v717_v21 = vadd.f32 %v715_v18, %v929_v1  ;;  %v718_v16 = vadd.f32 %v716_v20, %v937_v4 }
 0x525   :  { %719 = vst [vmem:[%s1150_s5] sm:$0xff] %v717_v21  ;;  %720 = vst [vmem:[%s1150_s5 + $0x8] sm:$0xff] %v718_v16 }

</bundles_post_ra>
